<compile_context>
chip_gen: v7x
topology: tpu7x:2x2x1
jax: 0.10.0
libtpu: 0.0.40
codegen_flags: <defaults>
</compile_context>

<pallas_src>
import jax
import jax.numpy as jnp
from jax import lax
from jax.experimental import pallas as pl
from jax.experimental.pallas import tpu as pltpu

# ---- config (mirrors cfg['model']) ------------------------------------------
MLP_LAYER_SIZES = [128, 128]   # cfg['model']['mlp_layer_sizes']
INPUT_FEAT_DIM = 128           # 'pn_rotation_net' branch
QUERY_DIM = 18                 # len_query (positionally-encoded SO(3) query)
BN_EPS = 1e-5


def _make_kernel(num_hidden, B, N):
    """Kernel body for a static number of hidden (Conv1d + BN + ReLU) blocks."""

    def kernel(*refs):
        feat_ref, qe_ref, wf_ref, wq_ref, fbias_ref = refs[:5]
        idx = 5
        hidden_refs = []
        for _ in range(num_hidden):
            hidden_refs.append(refs[idx:idx + 3])          # (w, gamma, beta)
            idx += 3
        wo_ref, bo_ref, out_ref = refs[idx], refs[idx + 1], refs[idx + 2]

        # feat branch: Linear(128, H0). Tiny [B,128]@[128,H0] bf16 matmul.
        # fbias already holds (feat bias + query bias) so the [B*N,H0] tensor
        # only needs a single broadcast add below.
        fp = jnp.dot(feat_ref[...], wf_ref[...],
                     preferred_element_type=jnp.float32) + fbias_ref[...]   # [B,H0] f32

        # query branch: Conv1d(18, H0, k=1) == matmul over the channel axis.
        qe2 = qe_ref[...].reshape(B * N, QUERY_DIM)                         # bf16
        qp = jnp.dot(qe2, wq_ref[...],
                     preferred_element_type=jnp.float32)                    # [B*N,H0] f32

        # x = relu(feat.unsqueeze(-1) + query)  -- broadcast feat per batch row.
        h0 = fp.shape[-1]
        x3 = qp.reshape(B, N, h0) + fp[:, None, :]                          # [B,N,H0]
        x = jnp.maximum(x3, 0.0).reshape(B * N, h0)                         # [B*N,H0] f32

        # hidden blocks: Conv1d(k=1, no bias needed) -> fused training-mode BN -> ReLU
        inv_n = 1.0 / float(B * N)
        for (w_ref, g_ref, beta_ref) in hidden_refs:
            h = jnp.dot(x.astype(jnp.bfloat16), w_ref[...],
                        preferred_element_type=jnp.float32)                 # [B*N,Hi] f32
            mean = jnp.sum(h, axis=0, keepdims=True) * inv_n                # [1,Hi]
            msq = jnp.sum(h * h, axis=0, keepdims=True) * inv_n             # [1,Hi]
            var = msq - mean * mean                                         # biased var
            scale = g_ref[...] * lax.rsqrt(var + BN_EPS)                    # [1,Hi]
            shift = beta_ref[...] - mean * scale                            # [1,Hi]
            x = jnp.maximum(h * scale + shift, 0.0)                         # [B*N,Hi]

        # final Conv1d(Hlast, 1, 1): computed as [1,H] @ x^T so the output row
        # is lane-dense (1, B*N). Kept in f32 (tiny matmul, exactness matters).
        o = jnp.dot(wo_ref[...], x.T,
                    preferred_element_type=jnp.float32)                     # [1, B*N]
        out_ref[...] = o + bo_ref[...]

    return kernel


def implicit_model_forward(feat, query_embedded, params):
    """feat: [B, C] f32, query_embedded: [B, N, QUERY_DIM] f32 -> [B, N] f32."""
    B, N, Q = query_embedded.shape
    assert Q == QUERY_DIM
    num_hidden = len(params["hidden"])

    # Wrapper-side prep: slice feat to the channels actually used, cast matmul
    # operands to bf16 (halves HBM->VMEM traffic, full-rate MXU), fold biases.
    feat_bf16 = feat[:, :INPUT_FEAT_DIM].astype(jnp.bfloat16)
    qe_bf16 = query_embedded.astype(jnp.bfloat16)
    fbias = (params["bf"] + params["bq"]).astype(jnp.float32)       # [1, H0]
    wo_row = params["wo"].reshape(1, -1).astype(jnp.float32)        # [1, Hlast]

    flat_inputs = [feat_bf16, qe_bf16,
                   params["wf"].astype(jnp.bfloat16),
                   params["wq"].astype(jnp.bfloat16),
                   fbias]
    for (w, _b, g, beta) in params["hidden"]:
        # _b (Conv1d bias) is intentionally not passed: BN mean-subtraction
        # cancels any per-channel constant, so it has no effect on the output.
        flat_inputs += [w.astype(jnp.bfloat16), g, beta]
    flat_inputs += [wo_row, params["bo"]]

    kernel = _make_kernel(num_hidden, B, N)
    vmem = pltpu.MemorySpace.VMEM
    out = pl.pallas_call(
        kernel,
        out_shape=jax.ShapeDtypeStruct((1, B * N), jnp.float32),    # lane-dense
        in_specs=[pl.BlockSpec(memory_space=vmem)] * len(flat_inputs),
        out_specs=pl.BlockSpec(memory_space=vmem),
        compiler_params=pltpu.CompilerParams(vmem_limit_bytes=32 * 1024 * 1024),
    )(*flat_inputs)
    return out.reshape(B, N)


def init_params(key):
    """Deterministic synthetic parameters with the shapes __init__ implies.

    Conv1d(k=1)/Linear weights are stored pre-transposed as [Cin, Cout] so the
    kernel contracts over the last (channel) axis directly.
    """
    sizes = MLP_LAYER_SIZES
    h0 = sizes[0]
    n_hidden = len(sizes) - 1
    keys = iter(jax.random.split(key, 6 + 4 * n_hidden + 2))
    s = 0.05

    params = {
        "wf": s * jax.random.normal(next(keys), (INPUT_FEAT_DIM, h0), jnp.float32),
        "bf": s * jax.random.normal(next(keys), (1, h0), jnp.float32),
        "wq": s * jax.random.normal(next(keys), (QUERY_DIM, h0), jnp.float32),
        "bq": s * jax.random.normal(next(keys), (1, h0), jnp.float32),
        "hidden": [],
    }
    dim = h0
    for i in range(1, len(sizes)):
        w = s * jax.random.normal(next(keys), (dim, sizes[i]), jnp.float32)
        b = s * jax.random.normal(next(keys), (1, sizes[i]), jnp.float32)
        g = 1.0 + s * jax.random.normal(next(keys), (1, sizes[i]), jnp.float32)
        beta = s * jax.random.normal(next(keys), (1, sizes[i]), jnp.float32)
        params["hidden"].append((w, b, g, beta))
        dim = sizes[i]
    params["wo"] = s * jax.random.normal(next(keys), (dim, 1), jnp.float32)
    params["bo"] = s * jax.random.normal(next(keys), (1, 1), jnp.float32)
    return params


def _bf16_matmul(a, b):
    """bf16 operands, f32 accumulation — mirrors the kernel's MXU dtype policy."""
    return jnp.dot(a.astype(jnp.bfloat16), b.astype(jnp.bfloat16),
                   preferred_element_type=jnp.float32)


def reference_forward(feat, qe, params):
    """Pure-JAX reference of the PyTorch forward (training-mode BN, with the
    redundant hidden-layer conv biases included) using the same bf16-matmul /
    f32-accumulate precision policy as the kernel."""
    f = feat[:, :INPUT_FEAT_DIM]
    feat_proj = _bf16_matmul(f, params["wf"]) + params["bf"]
    B, N, Q = qe.shape
    qp = _bf16_matmul(qe.reshape(B * N, Q), params["wq"]) + params["bq"]
    x = jax.nn.relu(feat_proj[:, None, :] + qp.reshape(B, N, -1))
    x = x.reshape(B * N, -1)
    for (w, b, g, beta) in params["hidden"]:
        h = _bf16_matmul(x, w) + b
        mean = h.mean(0, keepdims=True)
        var = ((h - mean) ** 2).mean(0, keepdims=True)          # biased (training mode)
        x = jax.nn.relu((h - mean) / jnp.sqrt(var + BN_EPS) * g + beta)
    o = x @ params["wo"] + params["bo"]                          # final layer in f32
    return o.reshape(B, N)


if __name__ == "__main__":
    key = jax.random.PRNGKey(0)
    k_feat, k_query, k_param = jax.random.split(key, 3)

    B, N, C = 2, 128, 256   # feat has extra channels; wrapper slices to :INPUT_FEAT_DIM
    feat = jax.random.normal(k_feat, (B, C), jnp.float32)
    query_embedded = jax.random.normal(k_query, (B, N, QUERY_DIM), jnp.float32)
    params = init_params(k_param)

    out = implicit_model_forward(feat, query_embedded, params)
    out = jax.block_until_ready(out)

    ref = reference_forward(feat, query_embedded, params)
    assert out.shape == (B, N)
    assert jnp.allclose(out, ref, atol=1e-3, rtol=1e-3), "mismatch vs reference"

    print("KERNEL_OK")
</pallas_src>

<mosaic_0001>
module attributes {stable_mosaic.version = 11 : i64} {
  func.func @kernel(%arg0: memref<2x128xbf16, #tpu.memory_space<vmem>>, %arg1: memref<2x128x18xbf16, #tpu.memory_space<vmem>>, %arg2: memref<128x128xbf16, #tpu.memory_space<vmem>>, %arg3: memref<18x128xbf16, #tpu.memory_space<vmem>>, %arg4: memref<1x128xf32, #tpu.memory_space<vmem>>, %arg5: memref<128x128xbf16, #tpu.memory_space<vmem>>, %arg6: memref<1x128xf32, #tpu.memory_space<vmem>>, %arg7: memref<1x128xf32, #tpu.memory_space<vmem>>, %arg8: memref<1x128xf32, #tpu.memory_space<vmem>>, %arg9: memref<1x1xf32, #tpu.memory_space<vmem>>, %arg10: memref<1x256xf32, #tpu.memory_space<vmem>>) attributes {dimension_semantics = [], scalar_prefetch = 0 : i64, scratch_operands = 0 : i64, tpu.core_type = #tpu.core_type<tc>} {
    %c0 = arith.constant 0 : index
    %c0_0 = arith.constant 0 : index
    %0 = vector.load %arg0[%c0, %c0_0] : memref<2x128xbf16, #tpu.memory_space<vmem>>, vector<2x128xbf16>
    %c0_1 = arith.constant 0 : index
    %c0_2 = arith.constant 0 : index
    %1 = vector.load %arg2[%c0_1, %c0_2] : memref<128x128xbf16, #tpu.memory_space<vmem>>, vector<128x128xbf16>
    %cst = arith.constant dense<0.000000e+00> : vector<2x128xf32>
    %2 = tpu.matmul %0, %1, %cst {dimension_numbers = #tpu.dot_dimension_numbers<[1], [0], [0], [1], [0, 0, 1, 1], [], []>} : vector<2x128xbf16>, vector<128x128xbf16>, vector<2x128xf32> -> vector<2x128xf32>
    %c0_3 = arith.constant 0 : index
    %c0_4 = arith.constant 0 : index
    %3 = vector.load %arg4[%c0_3, %c0_4] : memref<1x128xf32, #tpu.memory_space<vmem>>, vector<1x128xf32>
    %4 = vector.broadcast %3 : vector<1x128xf32> to vector<2x128xf32>
    %5 = arith.addf %2, %4 : vector<2x128xf32>
    %c0_5 = arith.constant 0 : index
    %c0_6 = arith.constant 0 : index
    %c0_7 = arith.constant 0 : index
    %6 = vector.load %arg1[%c0_5, %c0_6, %c0_7] : memref<2x128x18xbf16, #tpu.memory_space<vmem>>, vector<2x128x18xbf16>
    %7 = vector.shape_cast %6 : vector<2x128x18xbf16> to vector<256x18xbf16>
    %c0_8 = arith.constant 0 : index
    %c0_9 = arith.constant 0 : index
    %8 = vector.load %arg3[%c0_8, %c0_9] : memref<18x128xbf16, #tpu.memory_space<vmem>>, vector<18x128xbf16>
    %cst_10 = arith.constant dense<0.000000e+00> : vector<256x128xf32>
    %9 = tpu.matmul %7, %8, %cst_10 {dimension_numbers = #tpu.dot_dimension_numbers<[1], [0], [0], [1], [0, 0, 1, 1], [], []>} : vector<256x18xbf16>, vector<18x128xbf16>, vector<256x128xf32> -> vector<256x128xf32>
    %10 = vector.shape_cast %9 : vector<256x128xf32> to vector<2x128x128xf32>
    %11 = vector.shape_cast %5 : vector<2x128xf32> to vector<2x1x128xf32>
    %12 = vector.broadcast %11 : vector<2x1x128xf32> to vector<2x128x128xf32>
    %13 = arith.addf %10, %12 : vector<2x128x128xf32>
    %cst_11 = arith.constant 0.000000e+00 : f32
    %14 = vector.broadcast %cst_11 : f32 to vector<2x128x128xf32>
    %15 = arith.maximumf %13, %14 : vector<2x128x128xf32>
    %16 = vector.shape_cast %15 : vector<2x128x128xf32> to vector<256x128xf32>
    %17 = arith.truncf %16 : vector<256x128xf32> to vector<256x128xbf16>
    %c0_12 = arith.constant 0 : index
    %c0_13 = arith.constant 0 : index
    %18 = vector.load %arg5[%c0_12, %c0_13] : memref<128x128xbf16, #tpu.memory_space<vmem>>, vector<128x128xbf16>
    %cst_14 = arith.constant dense<0.000000e+00> : vector<256x128xf32>
    %19 = tpu.matmul %17, %18, %cst_14 {dimension_numbers = #tpu.dot_dimension_numbers<[1], [0], [0], [1], [0, 0, 1, 1], [], []>} : vector<256x128xbf16>, vector<128x128xbf16>, vector<256x128xf32> -> vector<256x128xf32>
    %cst_15 = arith.constant dense<0.000000e+00> : vector<128xf32>
    %20 = vector.multi_reduction <add>, %19, %cst_15 [0] : vector<256x128xf32> to vector<128xf32>
    %21 = vector.shape_cast %20 : vector<128xf32> to vector<1x128xf32>
    %cst_16 = arith.constant 3.906250e-03 : f32
    %22 = vector.broadcast %cst_16 : f32 to vector<1x128xf32>
    %23 = arith.mulf %21, %22 : vector<1x128xf32>
    %24 = arith.mulf %19, %19 : vector<256x128xf32>
    %cst_17 = arith.constant dense<0.000000e+00> : vector<128xf32>
    %25 = vector.multi_reduction <add>, %24, %cst_17 [0] : vector<256x128xf32> to vector<128xf32>
    %26 = vector.shape_cast %25 : vector<128xf32> to vector<1x128xf32>
    %cst_18 = arith.constant 3.906250e-03 : f32
    %27 = vector.broadcast %cst_18 : f32 to vector<1x128xf32>
    %28 = arith.mulf %26, %27 : vector<1x128xf32>
    %29 = arith.mulf %23, %23 : vector<1x128xf32>
    %30 = arith.subf %28, %29 : vector<1x128xf32>
    %c0_19 = arith.constant 0 : index
    %c0_20 = arith.constant 0 : index
    %31 = vector.load %arg6[%c0_19, %c0_20] : memref<1x128xf32, #tpu.memory_space<vmem>>, vector<1x128xf32>
    %cst_21 = arith.constant 9.99999974E-6 : f32
    %32 = vector.broadcast %cst_21 : f32 to vector<1x128xf32>
    %33 = arith.addf %30, %32 : vector<1x128xf32>
    %34 = math.rsqrt %33 : vector<1x128xf32>
    %35 = arith.mulf %31, %34 : vector<1x128xf32>
    %c0_22 = arith.constant 0 : index
    %c0_23 = arith.constant 0 : index
    %36 = vector.load %arg7[%c0_22, %c0_23] : memref<1x128xf32, #tpu.memory_space<vmem>>, vector<1x128xf32>
    %37 = arith.mulf %23, %35 : vector<1x128xf32>
    %38 = arith.subf %36, %37 : vector<1x128xf32>
    %39 = vector.broadcast %35 : vector<1x128xf32> to vector<256x128xf32>
    %40 = arith.mulf %19, %39 : vector<256x128xf32>
    %41 = vector.broadcast %38 : vector<1x128xf32> to vector<256x128xf32>
    %42 = arith.addf %40, %41 : vector<256x128xf32>
    %cst_24 = arith.constant 0.000000e+00 : f32
    %43 = vector.broadcast %cst_24 : f32 to vector<256x128xf32>
    %44 = arith.maximumf %42, %43 : vector<256x128xf32>
    %c0_25 = arith.constant 0 : index
    %c0_26 = arith.constant 0 : index
    %45 = vector.load %arg8[%c0_25, %c0_26] : memref<1x128xf32, #tpu.memory_space<vmem>>, vector<1x128xf32>
    %46 = tpu.transpose %44, [1, 0] : vector<256x128xf32> -> vector<128x256xf32>
    %cst_27 = arith.constant dense<0.000000e+00> : vector<1x256xf32>
    %47 = tpu.matmul %45, %46, %cst_27 {dimension_numbers = #tpu.dot_dimension_numbers<[1], [0], [0], [1], [0, 0, 1, 1], [], []>} : vector<1x128xf32>, vector<128x256xf32>, vector<1x256xf32> -> vector<1x256xf32>
    %c0_28 = arith.constant 0 : index
    %c0_29 = arith.constant 0 : index
    %48 = vector.load %arg9[%c0_28, %c0_29] : memref<1x1xf32, #tpu.memory_space<vmem>>, vector<1x1xf32>
    %49 = vector.broadcast %48 : vector<1x1xf32> to vector<1x256xf32>
    %50 = arith.addf %47, %49 : vector<1x256xf32>
    %c0_30 = arith.constant 0 : index
    %c0_31 = arith.constant 0 : index
    %51 = vector.load %arg10[%c0_30, %c0_31] : memref<1x256xf32, #tpu.memory_space<vmem>>, vector<1x256xf32>
    tpu.vector_store %arg10[%c0_30, %c0_31], %50 {strides = array<i32>} : memref<1x256xf32, #tpu.memory_space<vmem>>, vector<1x256xf32>,
    return
  }
}

</mosaic_0001>

<bundles_post_ra>
// kernel: tpu_custom_call.1
= control target key start
LH: loop header
LB: loop body
LE: loop exit
PB: predicated region body
PF: predicated region fallthrough
CT: control target
= control target key end

     0   :  { %s1939_s0 = inlined_call_operand.vmem [shape: bf16[2,128], index: 0, kind: input, shape index: {}]   ;;  %s1940_s1 = inlined_call_operand.vmem [shape: bf16[2,128,18], index: 1, kind: input, shape index: {}]   ;;  %s1941_s2 = inlined_call_operand.vmem [shape: bf16[128,128], index: 2, kind: input, shape index: {}]   ;;  %s1942_s3 = inlined_call_operand.vmem [shape: bf16[18,128], index: 3, kind: input, shape index: {}]   ;;  %s1943_s4 = inlined_call_operand.vmem [shape: f32[1,128], index: 4, kind: input, shape index: {}]   ;;  %s1944_s5 = inlined_call_operand.vmem [shape: bf16[128,128], index: 5, kind: input, shape index: {}]   ;;  %s1945_s6 = inlined_call_operand.vmem [shape: f32[1,128], index: 6, kind: input, shape index: {}]   ;;  %s1946_s7 = inlined_call_operand.vmem [shape: f32[1,128], index: 7, kind: input, shape index: {}]   ;;  %s1947_s8 = inlined_call_operand.vmem [shape: f32[1,128], index: 8, kind: input, shape index: {}]   ;;  %s1948_s9 = inlined_call_operand.<no memory space> [shape: f32[1,1], index: 9, kind: input, shape index: {}]   ;;  %s1949_s10 = inlined_call_operand.hbm [shape: f32[1,256], index: 10, kind: output, shape index: {}]  }
   0x1   :  { %v15_v0 = vstv %s1948_s9 }
   0x2   :  { %16 = vst [vmem:[#allocation2] sm:$0x1] %v15_v0 }
   0x3   :  { %v1450_v1 = vld [vmem:[%s1941_s2] sm:$0xff]   ;;  %v1510_v2 = vmov 0.0   ;;  %v1451_v3 = vld [vmem:[%s1941_s2 + $0x8] sm:$0xff]   ;;  %vm1511_vm0 = vmmov 0   ;;  %v1452_v4 = vld [vmem:[%s1941_s2 + $0x10] sm:$0xff]   ;;  %vm324_vm1 = vcmask 1040384  }
   0x4   :  { %1307 = vmatprep.subr.bf16.mxu1 %v1510_v2  ;;  %1323 = vmatprep.mubr.msk.bf16.mxu1 %vm1511_vm0, %v1510_v2  ;;  %v1453_v5 = vld [vmem:[%s1941_s2 + $0x18] sm:$0xff]   ;;  %v1454_v6 = vld [vmem:[%s1941_s2 + $0x20] sm:$0xff]   ;;  %v1455_v7 = vld [vmem:[%s1941_s2 + $0x28] sm:$0xff]   ;;  %vm275_vm2 = vcmask 146432  }
   0x5   :  { %1308 = vmatpush3.bf16.msra.mxu1 %v1450_v1  ;;  %v1456_v8 = vld [vmem:[%s1941_s2 + $0x30] sm:$0xff]   ;;  %v1457_v9 = vld [vmem:[%s1941_s2 + $0x38] sm:$0xff]   ;;  %v1458_v10 = vld [vmem:[%s1942_s3] sm:$0xff]  }
   0x6   :  { %1309 = vmatprep.subr.bf16.mxu1 %v1510_v2  ;;  %v1476_v11 = vld [vmem:[%s1944_s5] sm:$0xff]   ;;  %v1477_v12 = vld [vmem:[%s1944_s5 + $0x8] sm:$0xff]   ;;  %v1478_v16 = vld [vmem:[%s1944_s5 + $0x10] sm:$0xff]  }
   0x7   :  { %v39_v13 = vld [vmem:[%s1939_s0] sm:$0x1]  ;;  %1363 = vmatprep.subr.bf16.mxu0 %v1476_v11  ;;  %v1459_v14 = vld [vmem:[%s1942_s3 + $0x8] ss:$0 sps:$4 sm:$0x11]  }
   0x8   :  { %v1460_v15 = vld [vmem:[%s1940_s1] sm:$0xff]   ;;  %1364 = vmatpush3.bf16.msra.mxu0 %v1476_v11 }
   0x9   :  { %1310 = vmatpush3.bf16.msra.mxu1 %v1451_v3  ;;  %1365 = vmatprep.subr.bf16.mxu0 %v1477_v12 }
   0xa   :  { %1311 = vmatprep.subr.bf16.mxu1 %v1510_v2 }
   0xc   :  { %1366 = vmatpush3.bf16.msra.mxu0 %v1477_v12 }
   0xd   :  { %1312 = vmatpush3.bf16.msra.mxu1 %v1452_v4 }
   0xe   :  { %1313 = vmatprep.subr.bf16.mxu1 %v1510_v2 }
  0x11   :  { %1314 = vmatpush3.bf16.msra.mxu1 %v1453_v5 }
  0x12   :  { %1315 = vmatprep.subr.bf16.mxu1 %v1510_v2 }
  0x15   :  { %1316 = vmatpush3.bf16.msra.mxu1 %v1454_v6 }
  0x16   :  { %1317 = vmatprep.subr.bf16.mxu1 %v1510_v2 }
  0x19   :  { %1318 = vmatpush3.bf16.msra.mxu1 %v1455_v7 }
  0x1a   :  { %1319 = vmatprep.subr.bf16.mxu1 %v1510_v2 }
  0x1d   :  { %1320 = vmatpush3.bf16.msra.mxu1 %v1456_v8 }
  0x1e   :  { %1321 = vmatprep.subr.bf16.mxu1 %v1510_v2 }
  0x21   :  { %1322 = vmatpush3.bf16.msra.mxu1 %v1457_v9 }
  0x22   :  { %1327 = vmatprep.subr.bf16.mxu1 %v1458_v10 }
  0x24   :  { %1324 = vmatmul.mubr.bf16.vlgmr.msra.gmra.mrb[0].mxu1 %v39_v13 }
  0x25   :  { %17 = vsyncpa [#allocation4], 0  ;;  %1328 = vmatpush3.bf16.msra.mxu1 %v1458_v10  ;;  %1331 = vmatprep.mubr.msk.bf16.mxu1 %vm275_vm2, %v1460_v15  ;;  %v1479_v17 = vld [vmem:[%s1944_s5 + $0x18] sm:$0xff]   ;;  %v326_v18 = vsel %vm324_vm1, %v1459_v14, 0  ;;  %v1461_v19 = vld [vmem:[%s1940_s1 + $0x8] sm:$0xff]   ;;  %v493_v40 = vlaneseq }
  0x26   :  { %1443 = vmatprep.subr.msk.bf16.mxu1 %vm324_vm1, %v1459_v14  ;;  %1367 = vmatprep.subr.bf16.mxu0 %v1478_v16  ;;  %v1462_v20 = vld [vmem:[%s1940_s1 + $0x10] sm:$0xff]   ;;  %v1463_v21 = vld [vmem:[%s1940_s1 + $0x18] sm:$0xff]   ;;  %v1464_v22 = vld [vmem:[%s1940_s1 + $0x20] sm:$0xff]   ;;  %v1512_v38 = vmov 1966171168  }
  0x27   :  { %1368 = vmatpush3.bf16.msra.mxu0 %v1478_v16  ;;  %v1465_v23 = vld [vmem:[%s1940_s1 + $0x28] sm:$0xff]   ;;  %v1466_v24 = vld [vmem:[%s1940_s1 + $0x30] sm:$0xff]   ;;  %v1467_v25 = vld [vmem:[%s1940_s1 + $0x38] sm:$0xff]   ;;  %v491_v39 = vunpack.c.l.s4 %v1512_v38  ;;  %v494_v42 = vshrl.u32 %v493_v40, 7  ;;  %vm1154_vm3 = vcmp.lt.s32.totalorder %v493_v40, 256 }
  0x28   :  { %1369 = vmatprep.subr.bf16.mxu0 %v1479_v17  ;;  %v1468_v26 = vld [vmem:[%s1940_s1 + $0x40] sm:$0xff]   ;;  %v1469_v27 = vld [vmem:[%s1940_s1 + $0x48] sm:$0xff]   ;;  %v1470_v28 = vld [vmem:[%s1940_s1 + $0x50] sm:$0xff]  }
  0x29   :  { %1330 = vmatpush3.bf16.msra.mxu1 %v326_v18  ;;  %v1471_v29 = vld [vmem:[%s1940_s1 + $0x58] sm:$0xff]   ;;  %v1472_v30 = vld [vmem:[%s1940_s1 + $0x60] sm:$0xff]   ;;  %v1473_v31 = vld [vmem:[%s1940_s1 + $0x68] sm:$0xff]   ;;  %v492_v41 = vunpack.c.0.s8 %v491_v39  ;;  %v1701_v50 = vsub.s32 0, %v494_v42 }
  0x2a   :  { %v1474_v32 = vld [vmem:[%s1940_s1 + $0x70] sm:$0xff]   ;;  %v1475_v33 = vld [vmem:[%s1940_s1 + $0x78] sm:$0xff]   ;;  %v1480_v34 = vld [vmem:[%s1944_s5 + $0x20] sm:$0xff]  }
  0x2b   :  { %1370 = vmatpush3.bf16.msra.mxu0 %v1479_v17  ;;  %v1481_v35 = vld [vmem:[%s1944_s5 + $0x28] sm:$0xff]   ;;  %v1482_v36 = vld [vmem:[%s1944_s5 + $0x30] sm:$0xff]   ;;  %v1483_v37 = vld [vmem:[%s1944_s5 + $0x38] sm:$0xff]   ;;  %v1698_v44 = vsub.s32 %v492_v41, %v494_v42 }
  0x2c   :  { %1332 = vmatmul.mubr.msk.bf16.vlgmr.msra.gmra.mrb[4].mxu1 %vm275_vm2, %v1461_v19  ;;  %1371 = vmatprep.subr.bf16.mxu0 %v1480_v34  ;;  %v1171_v43 = vld [vmem:[%s1943_s4] ss:$0 sm:$0xff] }
  0x2d   :  { %1335 = vmatprep.mubr.msk.bf16.mxu1 %vm275_vm2, %v1462_v20 }
  0x2f   :  { %1372 = vmatpush3.bf16.msra.mxu0 %v1480_v34 }
  0x30   :  { %1373 = vmatprep.subr.bf16.mxu0 %v1481_v35 }
  0x33   :  { %1374 = vmatpush3.bf16.msra.mxu0 %v1481_v35 }
  0x34   :  { %1336 = vmatmul.mubr.msk.bf16.gmra.mrb[8].mxu1 %vm275_vm2, %v1463_v21  ;;  %1375 = vmatprep.subr.bf16.mxu0 %v1482_v36 }
  0x35   :  { %1339 = vmatprep.mubr.msk.bf16.mxu1 %vm275_vm2, %v1464_v22 }
  0x37   :  { %1376 = vmatpush3.bf16.msra.mxu0 %v1482_v36 }
  0x38   :  { %1377 = vmatprep.subr.bf16.mxu0 %v1483_v37 }
  0x3b   :  { %1378 = vmatpush3.bf16.msra.mxu0 %v1483_v37 }
  0x3c   :  { %1340 = vmatmul.mubr.msk.bf16.gmra.mrb[12].mxu1 %vm275_vm2, %v1465_v23 }
  0x3d   :  { %1343 = vmatprep.mubr.msk.bf16.mxu1 %vm275_vm2, %v1466_v24 }
  0x44   :  { %1344 = vmatmul.mubr.msk.bf16.gmra.mrb[16].mxu1 %vm275_vm2, %v1467_v25 }
  0x45   :  { %1347 = vmatprep.mubr.msk.bf16.mxu1 %vm275_vm2, %v1468_v26 }
  0x4c   :  { %1348 = vmatmul.mubr.msk.bf16.gmra.mrb[20].mxu1 %vm275_vm2, %v1469_v27 }
  0x4d   :  { %1351 = vmatprep.mubr.msk.bf16.mxu1 %vm275_vm2, %v1470_v28 }
  0x54   :  { %1352 = vmatmul.mubr.msk.bf16.gmra.mrb[24].mxu1 %vm275_vm2, %v1471_v29 }
  0x55   :  { %1355 = vmatprep.mubr.msk.bf16.mxu1 %vm275_vm2, %v1472_v30 }
  0x5c   :  { %1356 = vmatmul.mubr.msk.bf16.gmra.mrb[28].mxu1 %vm275_vm2, %v1473_v31 }
  0x5d   :  { %1359 = vmatprep.mubr.msk.bf16.mxu1 %vm275_vm2, %v1474_v32 }
  0x64   :  { %1360 = vmatmul.mubr.msk.bf16.gmra.mrb[32].mxu1 %vm275_vm2, %v1475_v33 }
  0xf7   :  { %v145_v45 = vpop.f32.mrb[0].mxu1 }
  0xf8   :  { %v146_v46 = vadd.f32 %v1171_v43, %v145_v45  ;;  %v1325_v47 = vpop.f32.mrb[1].mxu1 }
  0xf9   :  { %v148_v48 = vpop.f32.mrb[2].mxu1 }
  0xfa   :  { %v496_v49 = vrot.slane %v146_v46, %v1698_v44  ;;  %v1326_v51 = vpop.f32.mrb[3].mxu1 }
  0xfc   :  { %v504_v52 = vrot.slane %v496_v49, %v1698_v44  ;;  %v497_v30 = vcombine.high %v496_v49, %v496_v49 }
  0xfe   :  { %v515_v53 = vrot.slane %v504_v52, %v1701_v50  ;;  %v511_v38 = vrot.slane %v497_v30, %v1698_v44 }
  0xff   :  { %v1333_v54 = vpop.f32.mrb[4].mxu1 }
 0x100   :  { %v524_v55 = vadd.f32 %v1333_v54, %v515_v53  ;;  %v362_v56 = vpop.f32.mrb[5].mxu1  ;;  %v519_v48 = vrot.slane %v511_v38, %v1701_v50 }
 0x101   :  { %v522_v57 = vadd.f32 %v515_v53, %v362_v56  ;;  %v1334_v58 = vpop.f32.mrb[6].mxu1 }
 0x102   :  { %v525_v59 = vadd.f32 %v1334_v58, %v515_v53  ;;  %v365_v60 = vpop.f32.mrb[7].mxu1  ;;  %v556_v62 = vmax.f32 %v524_v55, 0.0 }
 0x103   :  { %v523_v61 = vadd.f32 %v515_v53, %v365_v60  ;;  %v554_v0 = vmax.f32 %v522_v57, 0.0 }
 0x104   :  { %v557_v63 = vmax.f32 %v525_v59, 0.0 }
 0x105   :  { %v555_v1 = vmax.f32 %v523_v61, 0.0 }
 0x106   :  { %v587_v2 = vpack.c.bf16 %v557_v63, %v556_v62 }
 0x107   :  { %v1337_v3 = vpop.f32.mrb[8].mxu1  ;;  %v586_v4 = vpack.c.bf16 %v555_v1, %v554_v0 }
 0x108   :  { %v528_v5 = vadd.f32 %v1337_v3, %v515_v53  ;;  %v378_v6 = vpop.f32.mrb[9].mxu1 }
 0x109   :  { %v526_v7 = vadd.f32 %v515_v53, %v378_v6  ;;  %v1338_v8 = vpop.f32.mrb[10].mxu1  ;;  %1379 = vmatprep.mubr.bf16.mxu0 %v586_v4 }
 0x10a   :  { %v529_v9 = vadd.f32 %v1338_v8, %v515_v53  ;;  %v381_v10 = vpop.f32.mrb[11].mxu1  ;;  %1380 = vmatmul.mubr.bf16.vlgmr.msra.gmra.mrb[0].mxu0 %v587_v2  ;;  %v560_v12 = vmax.f32 %v528_v5, 0.0 }
 0x10b   :  { %v527_v11 = vadd.f32 %v515_v53, %v381_v10  ;;  %v558_v14 = vmax.f32 %v526_v7, 0.0 }
 0x10c   :  { %v561_v13 = vmax.f32 %v529_v9, 0.0 }
 0x10d   :  { %v559_v15 = vmax.f32 %v527_v11, 0.0 }
 0x10e   :  { %v589_v16 = vpack.c.bf16 %v561_v13, %v560_v12 }
 0x10f   :  { %v588_v17 = vpack.c.bf16 %v559_v15, %v558_v14  ;;  %v1341_v18 = vpop.f32.mrb[12].mxu1 }
 0x110   :  { %v532_v19 = vadd.f32 %v1341_v18, %v515_v53  ;;  %v394_v20 = vpop.f32.mrb[13].mxu1 }
 0x111   :  { %v530_v21 = vadd.f32 %v515_v53, %v394_v20  ;;  %v1342_v22 = vpop.f32.mrb[14].mxu1  ;;  %1383 = vmatprep.mubr.bf16.mxu0 %v588_v17 }
 0x112   :  { %v533_v23 = vadd.f32 %v1342_v22, %v515_v53  ;;  %v397_v24 = vpop.f32.mrb[15].mxu1  ;;  %1384 = vmatmul.mubr.bf16.gmra.mrb[4].mxu0 %v589_v16  ;;  %v564_v26 = vmax.f32 %v532_v19, 0.0 }
 0x113   :  { %v531_v25 = vadd.f32 %v515_v53, %v397_v24  ;;  %v562_v28 = vmax.f32 %v530_v21, 0.0 }
 0x114   :  { %v565_v27 = vmax.f32 %v533_v23, 0.0 }
 0x115   :  { %v563_v29 = vmax.f32 %v531_v25, 0.0 }
 0x116   :  { %v591_v31 = vpack.c.bf16 %v565_v27, %v564_v26 }
 0x117   :  { %v590_v32 = vpack.c.bf16 %v563_v29, %v562_v28  ;;  %v1345_v33 = vpop.f32.mrb[16].mxu1 }
 0x118   :  { %v536_v34 = vadd.f32 %v1345_v33, %v515_v53  ;;  %v410_v35 = vpop.f32.mrb[17].mxu1 }
 0x119   :  { %v534_v36 = vadd.f32 %v515_v53, %v410_v35  ;;  %v1346_v37 = vpop.f32.mrb[18].mxu1  ;;  %1387 = vmatprep.mubr.bf16.mxu0 %v590_v32 }
 0x11a   :  { %v537_v39 = vadd.f32 %v1346_v37, %v515_v53  ;;  %v413_v41 = vpop.f32.mrb[19].mxu1  ;;  %1388 = vmatmul.mubr.bf16.gmra.mrb[8].mxu0 %v591_v31  ;;  %v568_v43 = vmax.f32 %v536_v34, 0.0 }
 0x11b   :  { %v535_v42 = vadd.f32 %v515_v53, %v413_v41  ;;  %v566_v46 = vmax.f32 %v534_v36, 0.0 }
 0x11c   :  { %v569_v45 = vmax.f32 %v537_v39, 0.0 }
 0x11d   :  { %v567_v47 = vmax.f32 %v535_v42, 0.0 }
 0x11e   :  { %v593_v49 = vpack.c.bf16 %v569_v45, %v568_v43 }
 0x11f   :  { %v592_v51 = vpack.c.bf16 %v567_v47, %v566_v46  ;;  %v1349_v52 = vpop.f32.mrb[20].mxu1 }
 0x120   :  { %v540_v54 = vadd.f32 %v1349_v52, %v519_v48  ;;  %v426_v55 = vpop.f32.mrb[21].mxu1 }
 0x121   :  { %v538_v56 = vadd.f32 %v519_v48, %v426_v55  ;;  %v1350_v57 = vpop.f32.mrb[22].mxu1  ;;  %1391 = vmatprep.mubr.bf16.mxu0 %v592_v51 }
 0x122   :  { %v541_v58 = vadd.f32 %v1350_v57, %v519_v48  ;;  %v429_v59 = vpop.f32.mrb[23].mxu1  ;;  %1392 = vmatmul.mubr.bf16.gmra.mrb[12].mxu0 %v593_v49  ;;  %v572_v61 = vmax.f32 %v540_v54, 0.0 }
 0x123   :  { %v539_v60 = vadd.f32 %v519_v48, %v429_v59  ;;  %v570_v62 = vmax.f32 %v538_v56, 0.0 }
 0x124   :  { %v573_v53 = vmax.f32 %v541_v58, 0.0 }
 0x125   :  { %v571_v63 = vmax.f32 %v539_v60, 0.0 }
 0x126   :  { %v595_v0 = vpack.c.bf16 %v573_v53, %v572_v61 }
 0x127   :  { %v594_v1 = vpack.c.bf16 %v571_v63, %v570_v62  ;;  %v1353_v2 = vpop.f32.mrb[24].mxu1 }
 0x128   :  { %v544_v3 = vadd.f32 %v1353_v2, %v519_v48  ;;  %v442_v4 = vpop.f32.mrb[25].mxu1 }
 0x129   :  { %v542_v5 = vadd.f32 %v519_v48, %v442_v4  ;;  %v1354_v6 = vpop.f32.mrb[26].mxu1  ;;  %1395 = vmatprep.mubr.bf16.mxu0 %v594_v1 }
 0x12a   :  { %v545_v7 = vadd.f32 %v1354_v6, %v519_v48  ;;  %v445_v8 = vpop.f32.mrb[27].mxu1  ;;  %1396 = vmatmul.mubr.bf16.gmra.mrb[16].mxu0 %v595_v0  ;;  %v576_v10 = vmax.f32 %v544_v3, 0.0 }
 0x12b   :  { %v543_v9 = vadd.f32 %v519_v48, %v445_v8  ;;  %v574_v12 = vmax.f32 %v542_v5, 0.0 }
 0x12c   :  { %v577_v11 = vmax.f32 %v545_v7, 0.0 }
 0x12d   :  { %v575_v13 = vmax.f32 %v543_v9, 0.0 }
 0x12e   :  { %v597_v14 = vpack.c.bf16 %v577_v11, %v576_v10 }
 0x12f   :  { %v596_v15 = vpack.c.bf16 %v575_v13, %v574_v12  ;;  %v1357_v16 = vpop.f32.mrb[28].mxu1 }
 0x130   :  { %v548_v17 = vadd.f32 %v1357_v16, %v519_v48  ;;  %v458_v18 = vpop.f32.mrb[29].mxu1 }
 0x131   :  { %v546_v19 = vadd.f32 %v519_v48, %v458_v18  ;;  %v1358_v20 = vpop.f32.mrb[30].mxu1  ;;  %1399 = vmatprep.mubr.bf16.mxu0 %v596_v15 }
 0x132   :  { %v549_v21 = vadd.f32 %v1358_v20, %v519_v48  ;;  %v461_v22 = vpop.f32.mrb[31].mxu1  ;;  %1400 = vmatmul.mubr.bf16.gmra.mrb[20].mxu0 %v597_v14  ;;  %v580_v24 = vmax.f32 %v548_v17, 0.0 }
 0x133   :  { %v547_v23 = vadd.f32 %v519_v48, %v461_v22  ;;  %v578_v26 = vmax.f32 %v546_v19, 0.0 }
 0x134   :  { %v581_v25 = vmax.f32 %v549_v21, 0.0 }
 0x135   :  { %v579_v27 = vmax.f32 %v547_v23, 0.0 }
 0x136   :  { %v599_v28 = vpack.c.bf16 %v581_v25, %v580_v24 }
 0x137   :  { %v598_v29 = vpack.c.bf16 %v579_v27, %v578_v26  ;;  %v1361_v30 = vpop.f32.mrb[32].mxu1 }
 0x138   :  { %v552_v31 = vadd.f32 %v1361_v30, %v519_v48  ;;  %v474_v32 = vpop.f32.mrb[33].mxu1 }
 0x139   :  { %v550_v33 = vadd.f32 %v519_v48, %v474_v32  ;;  %v1362_v34 = vpop.f32.mrb[34].mxu1  ;;  %1403 = vmatprep.mubr.bf16.mxu0 %v598_v29 }
 0x13a   :  { %v553_v35 = vadd.f32 %v1362_v34, %v519_v48  ;;  %v477_v36 = vpop.f32.mrb[35].mxu1  ;;  %1404 = vmatmul.mubr.bf16.gmra.mrb[24].mxu0 %v599_v28  ;;  %v584_v38 = vmax.f32 %v552_v31, 0.0 }
 0x13b   :  { %v551_v37 = vadd.f32 %v519_v48, %v477_v36  ;;  %v582_v41 = vmax.f32 %v550_v33, 0.0 }
 0x13c   :  { %v585_v39 = vmax.f32 %v553_v35, 0.0 }
 0x13d   :  { %v583_v42 = vmax.f32 %v551_v37, 0.0 }
 0x13e   :  { %v601_v43 = vpack.c.bf16 %v585_v39, %v584_v38 }
 0x13f   :  { %v600_v45 = vpack.c.bf16 %v583_v42, %v582_v41 }
 0x141   :  { %1407 = vmatprep.mubr.bf16.mxu0 %v600_v45 }
 0x142   :  { %1408 = vmatmul.mubr.bf16.gmra.mrb[28].mxu0 %v601_v43 }
 0x1dd   :  { %v1707_v46 = vpop.f32.mrb[0].mxu0 }
 0x1de   :  { %v1709_v47 = vpop.f32.mrb[1].mxu0  ;;  %v867_v55 = vmul.f32 %v1707_v46, %v1707_v46 }
 0x1df   :  { %v1711_v49 = vpop.f32.mrb[2].mxu0  ;;  %v865_v52 = vmul.f32 %v1709_v47, %v1709_v47 }
 0x1e0   :  { %v1713_v51 = vpop.f32.mrb[3].mxu0  ;;  %v868_v58 = vmul.f32 %v1711_v49, %v1711_v49 }
 0x1e1   :  { %v827_v48 = vadd.f32 %v1713_v51, %v1709_v47  ;;  %v866_v54 = vmul.f32 %v1713_v51, %v1713_v51 }
 0x1e3   :  { %v828_v56 = vadd.f32 %v1707_v46, %v827_v48  ;;  %v897_v57 = vadd.f32 %v866_v54, %v865_v52 }
 0x1e5   :  { %v898_v59 = vadd.f32 %v897_v57, %v867_v55  ;;  %v1726_v60 = vpop.f32.mrb[4].mxu0  ;;  %v829_v61 = vadd.f32 %v1711_v49, %v828_v56 }
 0x1e6   :  { %v1729_v53 = vpop.f32.mrb[5].mxu0  ;;  %v871_v6 = vmul.f32 %v1726_v60, %v1726_v60 }
 0x1e7   :  { %v830_v62 = vadd.f32 %v829_v61, %v1729_v53  ;;  %v869_v63 = vmul.f32 %v1729_v53, %v1729_v53  ;;  %v899_v0 = vadd.f32 %v898_v59, %v868_v58  ;;  %v1734_v1 = vpop.f32.mrb[6].mxu0 }
 0x1e8   :  { %v1736_v2 = vpop.f32.mrb[7].mxu0  ;;  %v872_v9 = vmul.f32 %v1734_v1, %v1734_v1 }
 0x1e9   :  { %v900_v3 = vadd.f32 %v899_v0, %v869_v63  ;;  %v831_v4 = vadd.f32 %v830_v62, %v1736_v2  ;;  %v870_v5 = vmul.f32 %v1736_v2, %v1736_v2 }
 0x1eb   :  { %v832_v7 = vadd.f32 %v1726_v60, %v831_v4  ;;  %v901_v8 = vadd.f32 %v900_v3, %v870_v5 }
 0x1ed   :  { %v902_v10 = vadd.f32 %v901_v8, %v871_v6  ;;  %v1746_v11 = vpop.f32.mrb[8].mxu0  ;;  %v833_v12 = vadd.f32 %v1734_v1, %v832_v7 }
 0x1ee   :  { %v1749_v13 = vpop.f32.mrb[9].mxu0  ;;  %v875_v22 = vmul.f32 %v1746_v11, %v1746_v11 }
 0x1ef   :  { %v834_v14 = vadd.f32 %v833_v12, %v1749_v13  ;;  %v873_v15 = vmul.f32 %v1749_v13, %v1749_v13  ;;  %v903_v16 = vadd.f32 %v902_v10, %v872_v9  ;;  %v1754_v17 = vpop.f32.mrb[10].mxu0 }
 0x1f0   :  { %v1756_v18 = vpop.f32.mrb[11].mxu0  ;;  %v876_v25 = vmul.f32 %v1754_v17, %v1754_v17 }
 0x1f1   :  { %v904_v19 = vadd.f32 %v903_v16, %v873_v15  ;;  %v835_v20 = vadd.f32 %v834_v14, %v1756_v18  ;;  %v874_v21 = vmul.f32 %v1756_v18, %v1756_v18 }
 0x1f3   :  { %v836_v23 = vadd.f32 %v1746_v11, %v835_v20  ;;  %v905_v24 = vadd.f32 %v904_v19, %v874_v21 }
 0x1f5   :  { %v906_v26 = vadd.f32 %v905_v24, %v875_v22  ;;  %v1766_v27 = vpop.f32.mrb[12].mxu0  ;;  %v837_v28 = vadd.f32 %v1754_v17, %v836_v23 }
 0x1f6   :  { %v1769_v29 = vpop.f32.mrb[13].mxu0  ;;  %v879_v38 = vmul.f32 %v1766_v27, %v1766_v27 }
 0x1f7   :  { %v838_v30 = vadd.f32 %v837_v28, %v1769_v29  ;;  %v877_v31 = vmul.f32 %v1769_v29, %v1769_v29  ;;  %v907_v32 = vadd.f32 %v906_v26, %v876_v25  ;;  %v1774_v33 = vpop.f32.mrb[14].mxu0 }
 0x1f8   :  { %v1776_v34 = vpop.f32.mrb[15].mxu0  ;;  %v880_v42 = vmul.f32 %v1774_v33, %v1774_v33 }
 0x1f9   :  { %v908_v35 = vadd.f32 %v907_v32, %v877_v31  ;;  %v839_v36 = vadd.f32 %v838_v30, %v1776_v34  ;;  %v878_v37 = vmul.f32 %v1776_v34, %v1776_v34 }
 0x1fb   :  { %v840_v39 = vadd.f32 %v1766_v27, %v839_v36  ;;  %v909_v41 = vadd.f32 %v908_v35, %v878_v37 }
 0x1fd   :  { %v910_v43 = vadd.f32 %v909_v41, %v879_v38  ;;  %v1786_v45 = vpop.f32.mrb[16].mxu0  ;;  %v841_v52 = vadd.f32 %v1774_v33, %v840_v39 }
 0x1fe   :  { %v1789_v48 = vpop.f32.mrb[17].mxu0  ;;  %v883_v63 = vmul.f32 %v1786_v45, %v1786_v45 }
 0x1ff   :  { %v842_v54 = vadd.f32 %v841_v52, %v1789_v48  ;;  %v881_v55 = vmul.f32 %v1789_v48, %v1789_v48  ;;  %v911_v56 = vadd.f32 %v910_v43, %v880_v42  ;;  %v1794_v57 = vpop.f32.mrb[18].mxu0 }
 0x200   :  { %v1796_v58 = vpop.f32.mrb[19].mxu0  ;;  %v884_v4 = vmul.f32 %v1794_v57, %v1794_v57 }
 0x201   :  { %v912_v59 = vadd.f32 %v911_v56, %v881_v55  ;;  %v843_v61 = vadd.f32 %v842_v54, %v1796_v58  ;;  %v882_v62 = vmul.f32 %v1796_v58, %v1796_v58  ;;  %v1847_v54 = vld [vmem:[%s1947_s8] sm:$0x1] }
 0x202   :  { %1305 = vmatprep.mubr.f32.mxu0 %v1847_v54 }
 0x203   :  { %v844_v0 = vadd.f32 %v1786_v45, %v843_v61  ;;  %v913_v3 = vadd.f32 %v912_v59, %v882_v62 }
 0x205   :  { %v914_v5 = vadd.f32 %v913_v3, %v883_v63  ;;  %v1806_v6 = vpop.f32.mrb[20].mxu0  ;;  %v845_v7 = vadd.f32 %v1794_v57, %v844_v0 }
 0x206   :  { %v1809_v8 = vpop.f32.mrb[21].mxu0  ;;  %v887_v21 = vmul.f32 %v1806_v6, %v1806_v6 }
 0x207   :  { %v846_v9 = vadd.f32 %v845_v7, %v1809_v8  ;;  %v885_v10 = vmul.f32 %v1809_v8, %v1809_v8  ;;  %v915_v12 = vadd.f32 %v914_v5, %v884_v4  ;;  %v1814_v14 = vpop.f32.mrb[22].mxu0 }
 0x208   :  { %v1816_v15 = vpop.f32.mrb[23].mxu0  ;;  %v888_v24 = vmul.f32 %v1814_v14, %v1814_v14 }
 0x209   :  { %v916_v16 = vadd.f32 %v915_v12, %v885_v10  ;;  %v847_v19 = vadd.f32 %v846_v9, %v1816_v15  ;;  %v886_v20 = vmul.f32 %v1816_v15, %v1816_v15  ;;  %v1053_v12 = vld [vmem:[#allocation2] sm:$0x1] }
 0x20b   :  { %v848_v22 = vadd.f32 %v1806_v6, %v847_v19  ;;  %v917_v23 = vadd.f32 %v916_v16, %v886_v20 }
 0x20d   :  { %v918_v25 = vadd.f32 %v917_v23, %v887_v21  ;;  %v1826_v26 = vpop.f32.mrb[24].mxu0  ;;  %v849_v28 = vadd.f32 %v1814_v14, %v848_v22  ;;  %v1513_v21 = vmov 0  }
 0x20e   :  { %v1829_v30 = vpop.f32.mrb[25].mxu0  ;;  %v891_v42 = vmul.f32 %v1826_v26, %v1826_v26  ;;  %1449 = vset.pattern.permute.xlu0 %v1513_v21 }
 0x20f   :  { %v850_v31 = vadd.f32 %v849_v28, %v1829_v30  ;;  %v889_v32 = vmul.f32 %v1829_v30, %v1829_v30  ;;  %v919_v35 = vadd.f32 %v918_v25, %v888_v24  ;;  %v1834_v36 = vpop.f32.mrb[26].mxu0  ;;  %1056 = vperm.xlu0 %1449, %v1053_v12  }
 0x210   :  { %v1836_v37 = vpop.f32.mrb[27].mxu0  ;;  %v892_v55 = vmul.f32 %v1834_v36, %v1834_v36 }
 0x211   :  { %v920_v38 = vadd.f32 %v919_v35, %v889_v32  ;;  %v851_v39 = vadd.f32 %v850_v31, %v1836_v37  ;;  %v890_v41 = vmul.f32 %v1836_v37, %v1836_v37 }
 0x213   :  { %v852_v43 = vadd.f32 %v1826_v26, %v851_v39  ;;  %v921_v52 = vadd.f32 %v920_v38, %v890_v41 }
 0x215   :  { %v922_v56 = vadd.f32 %v921_v52, %v891_v42  ;;  %v1852_v59 = vpop.f32.mrb[28].mxu0  ;;  %v853_v61 = vadd.f32 %v1834_v36, %v852_v43 }
 0x216   :  { %v1855_v62 = vpop.f32.mrb[29].mxu0  ;;  %v895_v16 = vmul.f32 %v1852_v59, %v1852_v59 }
 0x217   :  { %v854_v63 = vadd.f32 %v853_v61, %v1855_v62  ;;  %v893_v0 = vmul.f32 %v1855_v62, %v1855_v62  ;;  %v923_v3 = vadd.f32 %v922_v56, %v892_v55  ;;  %v1860_v4 = vpop.f32.mrb[30].mxu0 }
 0x218   :  { %v815_v5 = vpop.f32.mrb[31].mxu0  ;;  %v896_v22 = vmul.f32 %v1860_v4, %v1860_v4 }
 0x219   :  { %v924_v7 = vadd.f32 %v923_v3, %v893_v0  ;;  %v855_v9 = vadd.f32 %v854_v63, %v815_v5  ;;  %v894_v10 = vmul.f32 %v815_v5, %v815_v5 }
 0x21b   :  { %v856_v19 = vadd.f32 %v1852_v59, %v855_v9  ;;  %v925_v20 = vadd.f32 %v924_v7, %v894_v10  ;;  %v937_v9 = vld [vmem:[%s1945_s6] sm:$0x1]  ;;  %s1514_s6 = smov [#allocation3]  }
 0x21d   :  { %v857_v23 = vadd.f32 %v1860_v4, %v856_v19  ;;  %v926_v24 = vadd.f32 %v925_v20, %v895_v16  ;;  %v941_v16 = vld [vmem:[%s1946_s7] sm:$0x1]  ;;  %s1163_s7 = sshll.u32 %s1514_s6, 4  ;;  %s1164_s7 = int_to_ptr.vmem [resolvable:$true] %s1163_s7 }
 0x21e   :  { %s1486_s19 = scalar_lea.vmem %s1164_s7, 32  ;;  %p1491_p1 = scmp.lt.s32.totalorder %s1164_s7, %s1164_s7 }
 0x21f   :  { %v858_v25 = vrot.slane %v857_v23, 4  ;;  %v927_v28 = vadd.f32 %v926_v24, %v896_v22  ;;  %p1487_p0 = scmp.ne.s32.totalorder %s1164_s7, %s1486_s19  ;;  %p1492_p2 = scmp.lt.s32.totalorder %s1486_s19, %s1486_s19 }
 0x221   :  { %v859_v31 = vadd.f32 %v858_v25, %v857_v23  ;;  %v928_v32 = vrot.slane %v927_v28, 4  ;;  %p1493_p3 = por %p1492_p2, %p1491_p1 }
 0x223   :  { %v860_v35 = vrot.slane %v859_v31, 2  ;;  %v929_v38 = vadd.f32 %v928_v32, %v927_v28  ;;  %p1494_p4 = pnand %p1493_p3, %p1487_p0 }
 0x225   :  { %v861_v39 = vadd.f32 %v860_v35, %v859_v31  ;;  %v930_v41 = vrot.slane %v929_v38, 2 }
 0x227   :  { %v862_v42 = vrot.slane %v861_v39, 1  ;;  %v931_v43 = vadd.f32 %v930_v41, %v929_v38 }
 0x229   :  { %v863_v52 = vadd.f32 %v862_v42, %v861_v39  ;;  %v932_v55 = vrot.slane %v931_v43, 1 }
 0x22b   :  { %v864_v56 = vmul.f32 0.00390625, %v863_v52  ;;  %v933_v61 = vadd.f32 %v932_v55, %v931_v43 }
 0x22d   :  { %v934_v63 = vmul.f32 0.00390625, %v933_v61  ;;  %v935_v0 = vmul.f32 %v864_v56, %v864_v56 }
 0x22f   :  { %v936_v3 = vsub.f32 %v934_v63, %v935_v0 }
 0x231   :  { %v938_v7 = vadd.f32 1e-05, %v936_v3 }
 0x233   :  { %1484 = vrsqrt.f32 %v938_v7 }
 0x23d   :  { %v1485_v10 = vpop.eup %1484 }
 0x23e   :  { %v940_v12 = vmul.f32 %v1485_v10, %v937_v9 }
 0x240   :  { %v942_v19 = vmul.f32 %v940_v12, %v864_v56  ;;  %v948_v20 = vrot.slane %v940_v12, %v1701_v50 }
 0x242   :  { %v943_v21 = vsub.f32 %v941_v16, %v942_v19  ;;  %v979_v22 = vmul.f32 %v948_v20, %v815_v5  ;;  %v950_v23 = vmul.f32 %v948_v20, %v1709_v47  ;;  %v951_v24 = vmul.f32 %v948_v20, %v1713_v51 }
 0x243   :  { %v952_v25 = vmul.f32 %v1707_v46, %v948_v20  ;;  %v953_v28 = vmul.f32 %v1711_v49, %v948_v20  ;;  %v954_v31 = vmul.f32 %v948_v20, %v1729_v53  ;;  %v955_v32 = vmul.f32 %v948_v20, %v1736_v2 }
 0x244   :  { %v986_v35 = vrot.slane %v943_v21, %v1701_v50  ;;  %v956_v38 = vmul.f32 %v1726_v60, %v948_v20  ;;  %v957_v39 = vmul.f32 %v1734_v1, %v948_v20  ;;  %v958_v5 = vmul.f32 %v948_v20, %v1749_v13 }
 0x245   :  { %v959_v47 = vmul.f32 %v948_v20, %v1756_v18  ;;  %v960_v51 = vmul.f32 %v1746_v11, %v948_v20  ;;  %v961_v46 = vmul.f32 %v1754_v17, %v948_v20  ;;  %v962_v49 = vmul.f32 %v948_v20, %v1769_v29 }
 0x246   :  { %v1889_v41 = vadd.f32 %v986_v35, %v979_v22  ;;  %v963_v53 = vmul.f32 %v948_v20, %v1776_v34  ;;  %v964_v2 = vmul.f32 %v1766_v27, %v948_v20  ;;  %v965_v60 = vmul.f32 %v1774_v33, %v948_v20 }
 0x247   :  { %v966_v1 = vmul.f32 %v948_v20, %v1789_v48  ;;  %v967_v13 = vmul.f32 %v948_v20, %v1796_v58  ;;  %v968_v18 = vmul.f32 %v1786_v45, %v948_v20  ;;  %v969_v11 = vmul.f32 %v1794_v57, %v948_v20 }
 0x248   :  { %v970_v17 = vmul.f32 %v948_v20, %v1809_v8  ;;  %v971_v29 = vmul.f32 %v948_v20, %v1816_v15  ;;  %v972_v42 = vmul.f32 %v1806_v6, %v948_v20  ;;  %v973_v34 = vmul.f32 %v1814_v14, %v948_v20 }
 0x249   :  { %v974_v27 = vmul.f32 %v948_v20, %v1829_v30  ;;  %v975_v33 = vmul.f32 %v948_v20, %v1836_v37  ;;  %v976_v48 = vmul.f32 %v1826_v26, %v948_v20  ;;  %v977_v58 = vmul.f32 %v1834_v36, %v948_v20 }
 0x24a   :  { %v978_v45 = vmul.f32 %v948_v20, %v1855_v62  ;;  %v980_v57 = vmul.f32 %v1852_v59, %v948_v20  ;;  %v981_v8 = vmul.f32 %v1860_v4, %v948_v20  ;;  %v988_v43 = vadd.f32 %v986_v35, %v950_v23 }
 0x24b   :  { %v989_v15 = vadd.f32 %v986_v35, %v951_v24  ;;  %v990_v52 = vadd.f32 %v986_v35, %v952_v25  ;;  %v991_v6 = vadd.f32 %v986_v35, %v953_v28  ;;  %v992_v55 = vadd.f32 %v986_v35, %v954_v31 }
 0x24c   :  { %v993_v14 = vadd.f32 %v986_v35, %v955_v32  ;;  %v994_v56 = vadd.f32 %v986_v35, %v956_v38  ;;  %v995_v30 = vadd.f32 %v986_v35, %v957_v39  ;;  %v996_v61 = vadd.f32 %v986_v35, %v958_v5 }
 0x24d   :  { %v997_v37 = vadd.f32 %v986_v35, %v959_v47  ;;  %v998_v63 = vadd.f32 %v986_v35, %v960_v51  ;;  %v999_v26 = vadd.f32 %v986_v35, %v961_v46  ;;  %v1909_v0 = vadd.f32 %v986_v35, %v962_v49 }
 0x24e   :  { %v1911_v36 = vadd.f32 %v986_v35, %v963_v53  ;;  %v1913_v62 = vadd.f32 %v986_v35, %v964_v2  ;;  %v1915_v59 = vadd.f32 %v986_v35, %v965_v60  ;;  %v1004_v4 = vadd.f32 %v986_v35, %v966_v1 }
 0x24f   :  { %v1005_v3 = vadd.f32 %v986_v35, %v967_v13  ;;  %v1006_v7 = vadd.f32 %v986_v35, %v968_v18  ;;  %v1007_v9 = vadd.f32 %v986_v35, %v969_v11  ;;  %v1008_v10 = vadd.f32 %v986_v35, %v970_v17 }
 0x250   :  { %v1009_v12 = vadd.f32 %v986_v35, %v971_v29  ;;  %v1010_v16 = vadd.f32 %v986_v35, %v972_v42  ;;  %v1011_v19 = vadd.f32 %v986_v35, %v973_v34  ;;  %v1012_v20 = vadd.f32 %v986_v35, %v974_v27 }
 0x251   :  { %v1013_v21 = vadd.f32 %v986_v35, %v975_v33  ;;  %v1014_v22 = vadd.f32 %v986_v35, %v976_v48  ;;  %v1015_v23 = vadd.f32 %v986_v35, %v977_v58  ;;  %v1016_v24 = vadd.f32 %v986_v35, %v978_v45 }
 0x252   :  { %v1018_v25 = vadd.f32 %v986_v35, %v980_v57  ;;  %v1019_v28 = vadd.f32 %v986_v35, %v981_v8  ;;  %v1020_v31 = vmax.f32 %v988_v43, 0.0  ;;  %v1021_v32 = vmax.f32 %v989_v15, 0.0 }
 0x253   :  { %v1022_v38 = vmax.f32 %v990_v52, 0.0  ;;  %v1023_v39 = vmax.f32 %v991_v6, 0.0  ;;  %v1024_v5 = vmax.f32 %v992_v55, 0.0  ;;  %v1025_v47 = vmax.f32 %v993_v14, 0.0 }
 0x254   :  { %v1026_v51 = vmax.f32 %v994_v56, 0.0  ;;  %v1027_v46 = vmax.f32 %v995_v30, 0.0  ;;  %v1028_v49 = vmax.f32 %v996_v61, 0.0  ;;  %v1029_v53 = vmax.f32 %v997_v37, 0.0 }
 0x255   :  { %v1030_v2 = vmax.f32 %v998_v63, 0.0  ;;  %v1031_v60 = vmax.f32 %v999_v26, 0.0  ;;  %v1032_v1 = vmax.f32 %v1909_v0, 0.0  ;;  %v1033_v13 = vmax.f32 %v1911_v36, 0.0 }
 0x256   :  { %v1034_v18 = vmax.f32 %v1913_v62, 0.0  ;;  %v1035_v35 = vmax.f32 %v1915_v59, 0.0  ;;  %v1036_v11 = vmax.f32 %v1004_v4, 0.0  ;;  %v1037_v17 = vmax.f32 %v1005_v3, 0.0 }
 0x257   :  { %v1413_v29 = vpack.c.bf16 %v1021_v32, %v1020_v31  ;;  %v1038_v42 = vmax.f32 %v1006_v7, 0.0  ;;  %v1039_v34 = vmax.f32 %v1007_v9, 0.0  ;;  %v1417_v27 = vpack.c.bf16 %v1023_v39, %v1022_v38 }
 0x258   :  { %v1411_v33 = vpack.c.bf16 %v1037_v17, %v1036_v11  ;;  %v1040_v48 = vmax.f32 %v1008_v10, 0.0  ;;  %v1041_v58 = vmax.f32 %v1009_v12, 0.0  ;;  %v1421_v45 = vpack.c.bf16 %v1025_v47, %v1024_v5 }
 0x259   :  { %v1415_v57 = vpack.c.bf16 %v1039_v34, %v1038_v42  ;;  %v1042_v8 = vmax.f32 %v1010_v16, 0.0  ;;  %v1043_v43 = vmax.f32 %v1011_v19, 0.0  ;;  %v1425_v15 = vpack.c.bf16 %v1027_v46, %v1026_v51 }
 0x25a   :  { %1412 = vmatprep.subr.bf16.mxu0 %v1411_v33  ;;  %v1419_v52 = vpack.c.bf16 %v1041_v58, %v1040_v48  ;;  %v1044_v6 = vmax.f32 %v1012_v20, 0.0  ;;  %v1045_v55 = vmax.f32 %v1013_v21, 0.0  ;;  %v1429_v14 = vpack.c.bf16 %v1029_v53, %v1028_v49 }
 0x25b   :  { %1414 = vmatpush3.bf16.xpose.msra.mxu0 %v1413_v29  ;;  %v1423_v56 = vpack.c.bf16 %v1043_v43, %v1042_v8  ;;  %v1046_v30 = vmax.f32 %v1014_v22, 0.0  ;;  %v1047_v61 = vmax.f32 %v1015_v23, 0.0  ;;  %v1433_v37 = vpack.c.bf16 %v1031_v60, %v1030_v2 }
 0x25c   :  { %1416 = vmatprep.subr.bf16.mxu0 %v1415_v57  ;;  %v1427_v63 = vpack.c.bf16 %v1045_v55, %v1044_v6  ;;  %v1048_v26 = vmax.f32 %v1016_v24, 0.0  ;;  %v1049_v0 = vmax.f32 %v1889_v41, 0.0  ;;  %v1437_v36 = vpack.c.bf16 %v1033_v13, %v1032_v1 }
 0x25d   :  { %v1431_v62 = vpack.c.bf16 %v1047_v61, %v1046_v30  ;;  %v1050_v59 = vmax.f32 %v1018_v25, 0.0  ;;  %v1051_v4 = vmax.f32 %v1019_v28, 0.0  ;;  %v1441_v3 = vpack.c.bf16 %v1035_v35, %v1034_v18 }
 0x25e   :  { %v1435_v7 = vpack.c.bf16 %v1049_v0, %v1048_v26 }
 0x25f   :  { %v1439_v9 = vpack.c.bf16 %v1051_v4, %v1050_v59 }
 0x263   :  { %1418 = vmatpush3.bf16.xpose.msra.mxu0 %v1417_v27 }
 0x264   :  { %1420 = vmatprep.subr.bf16.mxu0 %v1419_v52 }
 0x26b   :  { %1422 = vmatpush3.bf16.xpose.msra.mxu0 %v1421_v45 }
 0x26c   :  { %1424 = vmatprep.subr.bf16.mxu0 %v1423_v56 }
 0x273   :  { %1426 = vmatpush3.bf16.xpose.msra.mxu0 %v1425_v15 }
 0x274   :  { %1428 = vmatprep.subr.bf16.mxu0 %v1427_v63 }
 0x27b   :  { %1430 = vmatpush3.bf16.xpose.msra.mxu0 %v1429_v14 }
 0x27c   :  { %1432 = vmatprep.subr.bf16.mxu0 %v1431_v62 }
 0x283   :  { %1434 = vmatpush3.bf16.xpose.msra.mxu0 %v1433_v37 }
 0x284   :  { %1436 = vmatprep.subr.bf16.mxu0 %v1435_v7 }
 0x28b   :  { %1438 = vmatpush3.bf16.xpose.msra.mxu0 %v1437_v36 }
 0x28c   :  { %1440 = vmatprep.subr.bf16.mxu0 %v1439_v9 }
 0x28e   :  { %v1057_v41 = vpop.permute.xlu0 %1056 }
 0x28f   :  { %v1062_v10 = vrot.slane %v1057_v41, %v1701_v50 }
 0x293   :  { %1442 = vmatpush3.bf16.xpose.msra.mxu0 %v1441_v3 }
 0x29a   :  { %1306 = vmatmul.mubr.f32.vlgmr.msra.gmra.mrb[32].mxu0 %v1847_v54 }
 0x36d   :  { %v1129_v12 = vpop.f32.mrb[32].mxu0 }
 0x36e   :  { %v1130_v16 = vadd.f32 %v1129_v12, %v1062_v10  ;;  %v1131_v19 = vpop.f32.mrb[33].mxu0 }
 0x36f   :  { %v1132_v20 = vadd.f32 %v1131_v19, %v1062_v10 }
 0x371   :  { %v1136_v21 = vcombine.low %v1130_v16, %v1132_v20 }
 0x373   :  { %v1143_v22 = vrot.slane %v1136_v21, %v1698_v44 }
 0x375   :  { %v1150_v23 = vrot.slane %v1143_v22, %v1698_v44 }
 0x377   :  { %1156 = vst.msk [vmem:[#allocation3] sm:$0x3] %vm1154_vm3, %v1150_v23 }
 0x378   :  { %1497 = shalt.err (!%p1494_p4)
}
 0x379   :  { %s1498_s21 = scalar_lea.hbm %s1949_s10, 32 }
 0x37a   :  { %p1499_p5 = scmp.ne.s32.totalorder %s1949_s10, %s1498_s21  ;;  %p1502_p6 = scmp.lt.u32.totalorder %s1498_s21, %s1949_s10 }
 0x37c   :  { %p1504_p7 = pnand %p1502_p6, %p1499_p5 }
 0x37e   :  { %1507 = shalt.err (!%p1504_p7)
}
 0x37f   :  { %1166 = dma.vmem_to_hbm [thread:$0]  %s1164_s7, 32, %s1949_s10, [#allocation4]  }
 0x380   :  { %1508 = dma.done.wait [#allocation4], 32  }
 0x381   :  { %1509 = vsyncadd [#allocation4], 4294967264 }
 0x382   :  { %1170 = vsyncpa [#allocation4], 1 }

</bundles_post_ra>
